<compile_context>
chip_gen: v7x
topology: tpu7x:2x2x1
jax: 0.10.0
libtpu: 0.0.40
codegen_flags: <defaults>
</compile_context>

<pallas_src>
import jax
import jax.numpy as jnp
from jax.experimental import pallas as pl
from jax.experimental.pallas import tpu as pltpu


def datenet_kernel(x_ref, w1_ref, b1_ref, w2_ref, b2_ref, w3_ref, b3_ref, o_ref):
    # fc1 on the MXU (K=4, f32). Fused bias + ReLU + bf16 downcast epilogue.
    h1 = jnp.dot(x_ref[...], w1_ref[...], preferred_element_type=jnp.float32)
    h1 = jnp.maximum(h1 + b1_ref[...], 0.0).astype(jnp.bfloat16)       # (tb, 256) bf16

    # fc2: bf16 MXU matmul, f32 accumulate; fused f32 bias/ReLU, bf16 output.
    h2 = jnp.dot(h1, w2_ref[...], preferred_element_type=jnp.float32)
    h2 = jnp.maximum(h2 + b2_ref[...], 0.0).astype(jnp.bfloat16)       # (tb, 512) bf16

    # fc3: bf16 MXU matmul (N=128 -> half-width on v6e/v7x MXU, accepted).
    h3 = jnp.dot(h2, w3_ref[...], preferred_element_type=jnp.float32)
    o_ref[...] = jnp.maximum(h3 + b3_ref[...], 0.0).astype(o_ref.dtype)


def _round_up(n, m):
    return ((n + m - 1) // m) * m


def _choose_tile(B, tb_cap):
    """Pick the batch tile.

    - B <= 256: single tile (launch-bound regime; batch calls upstream instead).
    - B  > 256: ~B/2 so there are >= 2 grid steps (v7x megacore sharding),
      multiple of 256 when large (fills MXU rows on v6e/v7x), capped at tb_cap
      (default 2048, which keeps the live set well inside v7x's 64 MiB VMEM).
    """
    if B <= 256:
        return max(8, _round_up(B, 8))
    align = 256 if B >= 512 else 8
    return min(tb_cap, _round_up(pl.cdiv(B, 2), align))


def datenet_forward(x, params, *, tb=2048):
    """x: (B, 4) float32. Returns (B, 128) float32."""
    w1, b1, w2, b2, w3, b3 = params
    # MXU layers fc2/fc3 take bf16 weights (full-rate MXU, half the DMA bytes);
    # fc1 weights and all biases stay f32 (f32 accumulate / f32 epilogues).
    w1 = w1.astype(jnp.float32)
    w2 = w2.astype(jnp.bfloat16)
    w3 = w3.astype(jnp.bfloat16)

    x = x.astype(jnp.float32)
    B = x.shape[0]

    tb_eff = _choose_tile(B, tb)
    grid = (pl.cdiv(B, tb_eff),)           # ragged last block handled by Pallas
    full = lambda i: (0, 0)                # weights/biases: single resident block

    flops = 2 * B * (4 * 256 + 256 * 512 + 512 * 128)
    bytes_accessed = (
        x.size * 4 + B * 128 * 4                # x in, y out (f32)
        + w1.size * 4 + b1.size * 4             # fc1 (f32)
        + w2.size * 2 + b2.size * 4             # fc2 (bf16 W, f32 b)
        + w3.size * 2 + b3.size * 4             # fc3 (bf16 W, f32 b)
    )

    return pl.pallas_call(
        datenet_kernel,
        out_shape=jax.ShapeDtypeStruct((B, 128), jnp.float32),
        grid_spec=pltpu.PrefetchScalarGridSpec(
            num_scalar_prefetch=0,
            grid=grid,
            in_specs=[
                pl.BlockSpec((tb_eff, 4), lambda i: (i, 0)),   # x tile
                pl.BlockSpec((4, 256), full),                  # W1 (f32)
                pl.BlockSpec((1, 256), full),                  # b1
                pl.BlockSpec((256, 512), full),                # W2 (bf16)
                pl.BlockSpec((1, 512), full),                  # b2
                pl.BlockSpec((512, 128), full),                # W3 (bf16)
                pl.BlockSpec((1, 128), full),                  # b3
            ],
            out_specs=pl.BlockSpec((tb_eff, 128), lambda i: (i, 0)),
        ),
        compiler_params=pltpu.CompilerParams(
            dimension_semantics=("parallel",),
            # Headroom below v7x's 64 MiB physical VMEM; live set at tb=2048 is
            # ~12 MiB, so this is generous on v5e/v6e (128 MiB) as well.
            vmem_limit_bytes=48 * 1024 * 1024,
        ),
        cost_estimate=pl.CostEstimate(
            flops=flops, transcendentals=0, bytes_accessed=bytes_accessed),
    )(x, w1, b1, w2, b2, w3, b3)


def init_params(key):
    """Deterministic PyTorch-style init: U(-1/sqrt(fan_in), 1/sqrt(fan_in))."""
    dims = [(4, 256), (256, 512), (512, 128)]
    params = []
    for (fan_in, fan_out) in dims:
        key, kw, kb = jax.random.split(key, 3)
        bound = 1.0 / jnp.sqrt(fan_in)
        w = jax.random.uniform(kw, (fan_in, fan_out), jnp.float32, -bound, bound)
        b = jax.random.uniform(kb, (1, fan_out), jnp.float32, -bound, bound)
        params += [w, b]
    return tuple(params)


def datenet_ref(x, params):
    """Precision-matched reference (bf16 activations into fc2/fc3, f32 accumulate)."""
    w1, b1, w2, b2, w3, b3 = params
    h1 = jax.nn.relu(x @ w1 + b1).astype(jnp.bfloat16)
    h2 = jax.nn.relu(
        jnp.dot(h1, w2.astype(jnp.bfloat16), preferred_element_type=jnp.float32) + b2
    ).astype(jnp.bfloat16)
    h3 = jax.nn.relu(
        jnp.dot(h2, w3.astype(jnp.bfloat16), preferred_element_type=jnp.float32) + b3
    )
    return h3


if __name__ == "__main__":
    key = jax.random.PRNGKey(0)
    kp, kx1, kx2 = jax.random.split(key, 3)
    params = init_params(kp)

    # Small-batch path (single small tile); input feature dim fixed at 4.
    B = 8
    x = jax.random.normal(kx1, (B, 4), jnp.float32)
    out = jax.block_until_ready(datenet_forward(x, params))
    ref = datenet_ref(x, params)
    assert out.shape == (B, 128)
    assert jnp.allclose(out, ref, atol=2e-2, rtol=2e-2)

    # Multi-step grid with a ragged final block (no wrapper pad/slice).
    B2 = 600
    x2 = jax.random.normal(kx2, (B2, 4), jnp.float32)
    out2 = jax.block_until_ready(datenet_forward(x2, params))
    ref2 = datenet_ref(x2, params)
    assert out2.shape == (B2, 128)
    assert jnp.allclose(out2, ref2, atol=2e-2, rtol=2e-2)

    print("KERNEL_OK")
</pallas_src>

<mosaic_0001>
module attributes {stable_mosaic.version = 11 : i64} {
  func.func @datenet_kernel(%arg0: i32, %arg1: memref<8x4xf32, #tpu.memory_space<vmem>>, %arg2: memref<4x256xf32, #tpu.memory_space<vmem>>, %arg3: memref<1x256xf32, #tpu.memory_space<vmem>>, %arg4: memref<256x512xbf16, #tpu.memory_space<vmem>>, %arg5: memref<1x512xf32, #tpu.memory_space<vmem>>, %arg6: memref<512x128xbf16, #tpu.memory_space<vmem>>, %arg7: memref<1x128xf32, #tpu.memory_space<vmem>>, %arg8: memref<8x128xf32, #tpu.memory_space<vmem>>) attributes {dimension_semantics = [#tpu.dimension_semantics<parallel>], iteration_bounds = array<i64: 1>, scalar_prefetch = 0 : i64, scratch_operands = 0 : i64, tpu.core_type = #tpu.core_type<tc>, window_params = [{transform_indices = @transform_0, window_bounds = array<i64: 8, 4>}, {pipeline_mode = #tpu.pipeline_mode<synchronous>, transform_indices = @transform_1, window_bounds = array<i64: 4, 256>}, {pipeline_mode = #tpu.pipeline_mode<synchronous>, transform_indices = @transform_2, window_bounds = array<i64: 1, 256>}, {pipeline_mode = #tpu.pipeline_mode<synchronous>, transform_indices = @transform_3, window_bounds = array<i64: 256, 512>}, {pipeline_mode = #tpu.pipeline_mode<synchronous>, transform_indices = @transform_4, window_bounds = array<i64: 1, 512>}, {pipeline_mode = #tpu.pipeline_mode<synchronous>, transform_indices = @transform_5, window_bounds = array<i64: 512, 128>}, {pipeline_mode = #tpu.pipeline_mode<synchronous>, transform_indices = @transform_6, window_bounds = array<i64: 1, 128>}, {transform_indices = @transform_7, window_bounds = array<i64: 8, 128>}]} {
    %c0 = arith.constant 0 : index
    %c0_0 = arith.constant 0 : index
    %0 = vector.load %arg1[%c0, %c0_0] : memref<8x4xf32, #tpu.memory_space<vmem>>, vector<8x4xf32>
    %c0_1 = arith.constant 0 : index
    %c0_2 = arith.constant 0 : index
    %1 = vector.load %arg2[%c0_1, %c0_2] : memref<4x256xf32, #tpu.memory_space<vmem>>, vector<4x256xf32>
    %cst = arith.constant dense<0.000000e+00> : vector<8x256xf32>
    %2 = tpu.matmul %0, %1, %cst {dimension_numbers = #tpu.dot_dimension_numbers<[1], [0], [0], [1], [0, 0, 1, 1], [], []>} : vector<8x4xf32>, vector<4x256xf32>, vector<8x256xf32> -> vector<8x256xf32>
    %c0_3 = arith.constant 0 : index
    %c0_4 = arith.constant 0 : index
    %3 = vector.load %arg3[%c0_3, %c0_4] : memref<1x256xf32, #tpu.memory_space<vmem>>, vector<1x256xf32>
    %4 = vector.broadcast %3 : vector<1x256xf32> to vector<8x256xf32>
    %5 = arith.addf %2, %4 : vector<8x256xf32>
    %cst_5 = arith.constant 0.000000e+00 : f32
    %6 = vector.broadcast %cst_5 : f32 to vector<8x256xf32>
    %7 = arith.maximumf %5, %6 : vector<8x256xf32>
    %8 = arith.truncf %7 : vector<8x256xf32> to vector<8x256xbf16>
    %c0_6 = arith.constant 0 : index
    %c0_7 = arith.constant 0 : index
    %9 = vector.load %arg4[%c0_6, %c0_7] : memref<256x512xbf16, #tpu.memory_space<vmem>>, vector<256x512xbf16>
    %cst_8 = arith.constant dense<0.000000e+00> : vector<8x512xf32>
    %10 = tpu.matmul %8, %9, %cst_8 {dimension_numbers = #tpu.dot_dimension_numbers<[1], [0], [0], [1], [0, 0, 1, 1], [], []>} : vector<8x256xbf16>, vector<256x512xbf16>, vector<8x512xf32> -> vector<8x512xf32>
    %c0_9 = arith.constant 0 : index
    %c0_10 = arith.constant 0 : index
    %11 = vector.load %arg5[%c0_9, %c0_10] : memref<1x512xf32, #tpu.memory_space<vmem>>, vector<1x512xf32>
    %12 = vector.broadcast %11 : vector<1x512xf32> to vector<8x512xf32>
    %13 = arith.addf %10, %12 : vector<8x512xf32>
    %cst_11 = arith.constant 0.000000e+00 : f32
    %14 = vector.broadcast %cst_11 : f32 to vector<8x512xf32>
    %15 = arith.maximumf %13, %14 : vector<8x512xf32>
    %16 = arith.truncf %15 : vector<8x512xf32> to vector<8x512xbf16>
    %c0_12 = arith.constant 0 : index
    %c0_13 = arith.constant 0 : index
    %17 = vector.load %arg6[%c0_12, %c0_13] : memref<512x128xbf16, #tpu.memory_space<vmem>>, vector<512x128xbf16>
    %cst_14 = arith.constant dense<0.000000e+00> : vector<8x128xf32>
    %18 = tpu.matmul %16, %17, %cst_14 {dimension_numbers = #tpu.dot_dimension_numbers<[1], [0], [0], [1], [0, 0, 1, 1], [], []>} : vector<8x512xbf16>, vector<512x128xbf16>, vector<8x128xf32> -> vector<8x128xf32>
    %c0_15 = arith.constant 0 : index
    %c0_16 = arith.constant 0 : index
    %19 = vector.load %arg7[%c0_15, %c0_16] : memref<1x128xf32, #tpu.memory_space<vmem>>, vector<1x128xf32>
    %20 = vector.broadcast %19 : vector<1x128xf32> to vector<8x128xf32>
    %21 = arith.addf %18, %20 : vector<8x128xf32>
    %cst_17 = arith.constant 0.000000e+00 : f32
    %22 = vector.broadcast %cst_17 : f32 to vector<8x128xf32>
    %23 = arith.maximumf %21, %22 : vector<8x128xf32>
    %c0_18 = arith.constant 0 : index
    %c0_19 = arith.constant 0 : index
    %24 = vector.load %arg8[%c0_18, %c0_19] : memref<8x128xf32, #tpu.memory_space<vmem>>, vector<8x128xf32>
    tpu.vector_store %arg8[%c0_18, %c0_19], %23 {strides = array<i32>} : memref<8x128xf32, #tpu.memory_space<vmem>>, vector<8x128xf32>,
    return
  }
  func.func @transform_0(%arg0: i32) -> (i32, i32) {
    %c0_i32 = arith.constant 0 : i32
    %c0_i32_0 = arith.constant 0 : i32
    return %arg0, %c0_i32 : i32, i32
  }
  func.func @transform_1(%arg0: i32) -> (i32, i32) {
    %c0_i32 = arith.constant 0 : i32
    %c0_i32_0 = arith.constant 0 : i32
    %c0_i32_1 = arith.constant 0 : i32
    return %c0_i32, %c0_i32_0 : i32, i32
  }
  func.func @transform_2(%arg0: i32) -> (i32, i32) {
    %c0_i32 = arith.constant 0 : i32
    %c0_i32_0 = arith.constant 0 : i32
    %c0_i32_1 = arith.constant 0 : i32
    return %c0_i32, %c0_i32_0 : i32, i32
  }
  func.func @transform_3(%arg0: i32) -> (i32, i32) {
    %c0_i32 = arith.constant 0 : i32
    %c0_i32_0 = arith.constant 0 : i32
    %c0_i32_1 = arith.constant 0 : i32
    return %c0_i32, %c0_i32_0 : i32, i32
  }
  func.func @transform_4(%arg0: i32) -> (i32, i32) {
    %c0_i32 = arith.constant 0 : i32
    %c0_i32_0 = arith.constant 0 : i32
    %c0_i32_1 = arith.constant 0 : i32
    return %c0_i32, %c0_i32_0 : i32, i32
  }
  func.func @transform_5(%arg0: i32) -> (i32, i32) {
    %c0_i32 = arith.constant 0 : i32
    %c0_i32_0 = arith.constant 0 : i32
    %c0_i32_1 = arith.constant 0 : i32
    return %c0_i32, %c0_i32_0 : i32, i32
  }
  func.func @transform_6(%arg0: i32) -> (i32, i32) {
    %c0_i32 = arith.constant 0 : i32
    %c0_i32_0 = arith.constant 0 : i32
    %c0_i32_1 = arith.constant 0 : i32
    return %c0_i32, %c0_i32_0 : i32, i32
  }
  func.func @transform_7(%arg0: i32) -> (i32, i32) {
    %c0_i32 = arith.constant 0 : i32
    %c0_i32_0 = arith.constant 0 : i32
    return %arg0, %c0_i32 : i32, i32
  }
}

</mosaic_0001>

<bundles_post_ra>
// kernel: tpu_custom_call.1
= control target key start
LH: loop header
LB: loop body
LE: loop exit
PB: predicated region body
PF: predicated region fallthrough
CT: control target
= control target key end

     0   :  { %12 = vsyncpa [#allocation3], 0  ;;  %s1479_s0 = inlined_call_operand.vmem [shape: f32[8,4], index: 0, kind: input, shape index: {}]   ;;  %s1480_s1 = inlined_call_operand.vmem [shape: f32[4,256], index: 1, kind: input, shape index: {}]   ;;  %s1481_s2 = inlined_call_operand.vmem [shape: f32[1,256], index: 2, kind: input, shape index: {}]   ;;  %s1482_s3 = inlined_call_operand.hbm [shape: bf16[256,512], index: 3, kind: input, shape index: {}]   ;;  %s1483_s4 = inlined_call_operand.vmem [shape: f32[1,512], index: 4, kind: input, shape index: {}]   ;;  %s1484_s5 = inlined_call_operand.hbm [shape: bf16[512,128], index: 5, kind: input, shape index: {}]   ;;  %s1485_s6 = inlined_call_operand.vmem [shape: f32[1,128], index: 6, kind: input, shape index: {}]   ;;  %s1486_s7 = inlined_call_operand.hbm [shape: f32[8,128], index: 7, kind: output, shape index: {}]  }
   0x1   :  { %13 = vsyncpa [#allocation6], 0 }
   0x2   :  { %14 = vsyncpa [#allocation4], 0  ;;  %s1366_s24 = smov [#allocation2]   ;;  %s1294_s28 = scalar_lea.hbm %s1482_s3, 8192 }
   0x3   :  { %s26_s25 = sshll.u32 %s1366_s24, 4  ;;  %p1295_p0 = scmp.ne.s32.totalorder %s1482_s3, %s1294_s28  ;;  %s27_s25 = int_to_ptr.vmem [resolvable:$true] %s26_s25 }
   0x4   :  { %p1298_p1 = scmp.lt.u32.totalorder %s1294_s28, %s1482_s3 }
   0x6   :  { %p1300_p2 = pnand %p1298_p1, %p1295_p0 }
   0x8   :  { %1303 = shalt.err (!%p1300_p2)
}
   0x9   :  { %s1304_s10 = scalar_lea.vmem %s27_s25, 8192  ;;  %p1309_p4 = scmp.lt.s32.totalorder %s27_s25, %s27_s25 }
   0xa   :  { %p1305_p3 = scmp.ne.s32.totalorder %s27_s25, %s1304_s10  ;;  %p1310_p5 = scmp.lt.s32.totalorder %s1304_s10, %s1304_s10 }
   0xc   :  { %p1311_p6 = por %p1310_p5, %p1309_p4 }
   0xe   :  { %p1312_p7 = pnand %p1311_p6, %p1305_p3 }
  0x10   :  { %1315 = shalt.err (!%p1312_p7)
}
  0x11   :  { %s1367_s11 = smov 256   ;;  %s1368_s12 = smov 16  }
  0x12   :  { %32 = dma.hbm_to_vmem [thread:$0]  %s1482_s3, 8192, %s27_s25, [#allocation3], %s1367_s11, %s1367_s11, %s1368_s12  }
  0x13   :  { %s1369_s15 = smov [#allocation5]   ;;  %s1316_s19 = scalar_lea.hbm %s1484_s5, 4096 }
  0x14   :  { %s40_s16 = sshll.u32 %s1369_s15, 4  ;;  %p1317_p8 = scmp.ne.s32.totalorder %s1484_s5, %s1316_s19  ;;  %s41_s16 = int_to_ptr.vmem [resolvable:$true] %s40_s16 }
  0x15   :  { %p1320_p9 = scmp.lt.u32.totalorder %s1316_s19, %s1484_s5 }
  0x17   :  { %p1322_p10 = pnand %p1320_p9, %p1317_p8 }
  0x19   :  { %1325 = shalt.err (!%p1322_p10)
}
  0x1a   :  { %s1326_s24 = scalar_lea.vmem %s41_s16, 4096  ;;  %p1331_p12 = scmp.lt.s32.totalorder %s41_s16, %s41_s16 }
  0x1b   :  { %p1327_p11 = scmp.ne.s32.totalorder %s41_s16, %s1326_s24  ;;  %p1332_p13 = scmp.lt.s32.totalorder %s1326_s24, %s1326_s24 }
  0x1d   :  { %p1333_p0 = por %p1332_p13, %p1331_p12 }
  0x1f   :  { %p1334_p1 = pnand %p1333_p0, %p1327_p11 }
  0x21   :  { %1337 = shalt.err (!%p1334_p1)
}
  0x22   :  { %s1370_s3 = smov 64   ;;  %s1371_s25 = smov 4  }
  0x23   :  { %46 = dma.hbm_to_vmem [thread:$0]  %s1484_s5, 4096, %s41_s16, [#allocation6], %s1370_s3, %s1370_s3, %s1371_s25  }
  0x24   :  { %1360 = dma.done.wait [#allocation3], 8192  }
  0x25   :  { %1361 = vsyncadd [#allocation3], 4294959104 }
  0x26   :  { %1362 = dma.done.wait [#allocation6], 4096  }
  0x27   :  { %1363 = vsyncadd [#allocation6], 4294963200  ;;  %v1372_v0 = vmov 0.0   ;;  %v57_v1 = vld [vmem:[%s1480_s1] sm:$0xff]  ;;  %vm76_vm0 = vcmask 1043456   ;;  %vm72_vm1 = vcmask 31744  }
  0x28   :  { %145 = vmatprep.mubr.f32.mxu0 %v1372_v0  ;;  %v56_v2 = vld [vmem:[%s1479_s0] sm:$0xff]  ;;  %v71_v3 = vcombine.high %v57_v1, %v57_v1  ;;  %v1166_v4 = vld [vmem:[#allocation2 + $0x4] ss:$16 sps:$4 sm:$0xff]   ;;  %v1171_v7 = vld [vmem:[#allocation2] ss:$16 sps:$4 sm:$0xff]   ;;  %s1373_s10 = smov [#allocation7]  }
  0x29   :  { %v1168_v5 = vld [vmem:[#allocation2 + $0x8] ss:$16 sps:$4 sm:$0xff]   ;;  %v1170_v6 = vld [vmem:[#allocation2 + $0xc] ss:$16 sps:$4 sm:$0xff]   ;;  %562 = vmatprep.subr.bf16.mxu1 %v1166_v4  ;;  %v1172_v8 = vld [vmem:[#allocation2 + $0x24] ss:$16 sps:$4 sm:$0xff]  }
  0x2a   :  { %1013 = vmatprep.subr.msk.mxu0 %vm76_vm0, %v71_v3  ;;  %v1174_v9 = vld [vmem:[#allocation2 + $0x28] ss:$16 sps:$4 sm:$0xff]   ;;  %v1176_v10 = vld [vmem:[#allocation2 + $0x2c] ss:$16 sps:$4 sm:$0xff]   ;;  %563 = vmatpush1.bf16.msra.mxu1 %v1171_v7  ;;  %v1177_v11 = vld [vmem:[#allocation2 + $0x20] ss:$16 sps:$4 sm:$0xff]  }
  0x2b   :  { %1014 = vmatpush1.msk.msra.mxu0 %vm76_vm0, %v57_v1  ;;  %564 = vmatprep.subr.bf16.mxu1 %v1172_v8  ;;  %v1178_v12 = vld [vmem:[#allocation2 + $0x44] ss:$16 sps:$4 sm:$0xff]   ;;  %v1182_v13 = vld [vmem:[#allocation2 + $0x4c] ss:$16 sps:$4 sm:$0xff]   ;;  %v1180_v14 = vld [vmem:[#allocation2 + $0x48] ss:$16 sps:$4 sm:$0xff]  }
  0x2c   :  { %1015 = vmatmul.mubr.msk.f32.vlgmr.msra.gmra.mrb[0].mxu0 %vm72_vm1, %v56_v2  ;;  %603 = vmatprep.subr.bf16.mxu0 %v1170_v6  ;;  %v1183_v15 = vld [vmem:[#allocation2 + $0x40] ss:$16 sps:$4 sm:$0xff]   ;;  %v1184_v16 = vld [vmem:[#allocation2 + $0x64] ss:$16 sps:$4 sm:$0xff]   ;;  %v1188_v17 = vld [vmem:[#allocation2 + $0x6c] ss:$16 sps:$4 sm:$0xff]   ;;  %v60_v6 = vlaneseq }
  0x2d   :  { %604 = vmatpush1.bf16.msra.mxu0 %v1168_v5  ;;  %v1186_v18 = vld [vmem:[#allocation2 + $0x68] ss:$16 sps:$4 sm:$0xff]   ;;  %v1189_v19 = vld [vmem:[#allocation2 + $0x60] ss:$16 sps:$4 sm:$0xff]   ;;  %v1190_v20 = vld [vmem:[#allocation2 + $0x84] ss:$16 sps:$4 sm:$0xff]  }
  0x2e   :  { %605 = vmatprep.subr.bf16.mxu0 %v1176_v10  ;;  %565 = vmatpush1.bf16.msra.mxu1 %v1177_v11  ;;  %v1194_v21 = vld [vmem:[#allocation2 + $0x8c] ss:$16 sps:$4 sm:$0xff]   ;;  %v1192_v22 = vld [vmem:[#allocation2 + $0x88] ss:$16 sps:$4 sm:$0xff]   ;;  %v1195_v23 = vld [vmem:[#allocation2 + $0x80] ss:$16 sps:$4 sm:$0xff]  }
  0x2f   :  { %566 = vmatprep.subr.bf16.mxu1 %v1178_v12  ;;  %v1196_v24 = vld [vmem:[#allocation2 + $0xa4] ss:$16 sps:$4 sm:$0xff]   ;;  %v1200_v25 = vld [vmem:[#allocation2 + $0xac] ss:$16 sps:$4 sm:$0xff]   ;;  %v1198_v26 = vld [vmem:[#allocation2 + $0xa8] ss:$16 sps:$4 sm:$0xff]  }
  0x30   :  { %v1201_v27 = vld [vmem:[#allocation2 + $0xa0] ss:$16 sps:$4 sm:$0xff]   ;;  %v1202_v28 = vld [vmem:[#allocation2 + $0xc4] ss:$16 sps:$4 sm:$0xff]   ;;  %v1206_v29 = vld [vmem:[#allocation2 + $0xcc] ss:$16 sps:$4 sm:$0xff]  }
  0x31   :  { %606 = vmatpush1.bf16.msra.mxu0 %v1174_v9  ;;  %v1204_v30 = vld [vmem:[#allocation2 + $0xc8] ss:$16 sps:$4 sm:$0xff]   ;;  %v1207_v31 = vld [vmem:[#allocation2 + $0xc0] ss:$16 sps:$4 sm:$0xff]   ;;  %v1208_v32 = vld [vmem:[#allocation2 + $0xe4] ss:$16 sps:$4 sm:$0xff]  }
  0x32   :  { %607 = vmatprep.subr.bf16.mxu0 %v1182_v13  ;;  %567 = vmatpush1.bf16.msra.mxu1 %v1183_v15  ;;  %v1212_v33 = vld [vmem:[#allocation2 + $0xec] ss:$16 sps:$4 sm:$0xff]   ;;  %v1210_v34 = vld [vmem:[#allocation2 + $0xe8] ss:$16 sps:$4 sm:$0xff]   ;;  %v1213_v35 = vld [vmem:[#allocation2 + $0xe0] ss:$16 sps:$4 sm:$0xff]  }
  0x33   :  { %568 = vmatprep.subr.bf16.mxu1 %v1184_v16  ;;  %v1214_v36 = vld [vmem:[#allocation2 + $0x104] ss:$16 sps:$4 sm:$0xff]   ;;  %v1218_v37 = vld [vmem:[#allocation2 + $0x10c] ss:$16 sps:$4 sm:$0xff]   ;;  %v1216_v38 = vld [vmem:[#allocation2 + $0x108] ss:$16 sps:$4 sm:$0xff]  }
  0x34   :  { %v1219_v39 = vld [vmem:[#allocation2 + $0x100] ss:$16 sps:$4 sm:$0xff]   ;;  %v1220_v40 = vld [vmem:[#allocation2 + $0x124] ss:$16 sps:$4 sm:$0xff]   ;;  %v1224_v41 = vld [vmem:[#allocation2 + $0x12c] ss:$16 sps:$4 sm:$0xff]  }
  0x35   :  { %608 = vmatpush1.bf16.msra.mxu0 %v1180_v14  ;;  %v1222_v42 = vld [vmem:[#allocation2 + $0x128] ss:$16 sps:$4 sm:$0xff]   ;;  %v1225_v43 = vld [vmem:[#allocation2 + $0x120] ss:$16 sps:$4 sm:$0xff]   ;;  %v1226_v44 = vld [vmem:[#allocation2 + $0x144] ss:$16 sps:$4 sm:$0xff]  }
  0x36   :  { %609 = vmatprep.subr.bf16.mxu0 %v1188_v17  ;;  %569 = vmatpush1.bf16.msra.mxu1 %v1189_v19  ;;  %v1230_v45 = vld [vmem:[#allocation2 + $0x14c] ss:$16 sps:$4 sm:$0xff]   ;;  %v1228_v46 = vld [vmem:[#allocation2 + $0x148] ss:$16 sps:$4 sm:$0xff]   ;;  %v1231_v47 = vld [vmem:[#allocation2 + $0x140] ss:$16 sps:$4 sm:$0xff]  }
  0x37   :  { %570 = vmatprep.subr.bf16.mxu1 %v1190_v20  ;;  %v1232_v48 = vld [vmem:[#allocation2 + $0x164] ss:$16 sps:$4 sm:$0xff]   ;;  %v1236_v49 = vld [vmem:[#allocation2 + $0x16c] ss:$16 sps:$4 sm:$0xff]   ;;  %v1234_v50 = vld [vmem:[#allocation2 + $0x168] ss:$16 sps:$4 sm:$0xff]  }
  0x38   :  { %v1237_v51 = vld [vmem:[#allocation2 + $0x160] ss:$16 sps:$4 sm:$0xff]   ;;  %v1238_v52 = vld [vmem:[#allocation2 + $0x184] ss:$16 sps:$4 sm:$0xff]   ;;  %v1242_v53 = vld [vmem:[#allocation2 + $0x18c] ss:$16 sps:$4 sm:$0xff]  }
  0x39   :  { %610 = vmatpush1.bf16.msra.mxu0 %v1186_v18  ;;  %v1240_v54 = vld [vmem:[#allocation2 + $0x188] ss:$16 sps:$4 sm:$0xff]   ;;  %v1243_v55 = vld [vmem:[#allocation2 + $0x180] ss:$16 sps:$4 sm:$0xff]   ;;  %v1244_v56 = vld [vmem:[#allocation2 + $0x1a4] ss:$16 sps:$4 sm:$0xff]  }
  0x3a   :  { %611 = vmatprep.subr.bf16.mxu0 %v1194_v21  ;;  %571 = vmatpush1.bf16.msra.mxu1 %v1195_v23  ;;  %v1248_v57 = vld [vmem:[#allocation2 + $0x1ac] ss:$16 sps:$4 sm:$0xff]   ;;  %v1246_v58 = vld [vmem:[#allocation2 + $0x1a8] ss:$16 sps:$4 sm:$0xff]   ;;  %v1249_v59 = vld [vmem:[#allocation2 + $0x1a0] ss:$16 sps:$4 sm:$0xff]  }
  0x3b   :  { %572 = vmatprep.subr.bf16.mxu1 %v1196_v24  ;;  %v1250_v60 = vld [vmem:[#allocation2 + $0x1c4] ss:$16 sps:$4 sm:$0xff]   ;;  %v1254_v61 = vld [vmem:[#allocation2 + $0x1cc] ss:$16 sps:$4 sm:$0xff]   ;;  %v1252_v62 = vld [vmem:[#allocation2 + $0x1c8] ss:$16 sps:$4 sm:$0xff]  }
  0x3c   :  { %v1255_v63 = vld [vmem:[#allocation2 + $0x1c0] ss:$16 sps:$4 sm:$0xff]   ;;  %v1256_v0 = vld [vmem:[#allocation2 + $0x1e4] ss:$16 sps:$4 sm:$0xff]   ;;  %v1260_v1 = vld [vmem:[#allocation2 + $0x1ec] ss:$16 sps:$4 sm:$0xff]  }
  0x3d   :  { %612 = vmatpush1.bf16.msra.mxu0 %v1192_v22  ;;  %v1258_v2 = vld [vmem:[#allocation2 + $0x1e8] ss:$16 sps:$4 sm:$0xff]   ;;  %v1261_v3 = vld [vmem:[#allocation2 + $0x1e0] ss:$16 sps:$4 sm:$0xff]   ;;  %v1444_v7 = vshrl.u32 %v60_v6, 7  ;;  %s1003_s11 = sshll.u32 %s1373_s10, 4  ;;  %s1004_s11 = int_to_ptr.vmem [resolvable:$true] %s1003_s11 }
  0x3e   :  { %613 = vmatprep.subr.bf16.mxu0 %v1200_v25  ;;  %573 = vmatpush1.bf16.msra.mxu1 %v1201_v27  ;;  %v1262_v4 = vld [vmem:[#allocation5 + $0x40] sm:$0xff]   ;;  %v58_v9 = vld [vmem:[%s1481_s2] sm:$0x3]  ;;  %v1266_v23 = vld [vmem:[#allocation5 + $0x48] sm:$0xff]   ;;  %s1338_s12 = scalar_lea.vmem %s1004_s11, 128  ;;  %p1343_p3 = scmp.lt.s32.totalorder %s1004_s11, %s1004_s11 }
  0x3f   :  { %574 = vmatprep.subr.bf16.mxu1 %v1202_v28  ;;  %v1263_v5 = vld [vmem:[#allocation5 + $0xc0] sm:$0xff]   ;;  %v62_v8 = vsub.s32 0, %v1444_v7  ;;  %v66_v10 = vsub.s32 1, %v1444_v7  ;;  %v1267_v24 = vld [vmem:[#allocation5 + $0xc8] sm:$0xff]   ;;  %v1270_v27 = vld [vmem:[#allocation5 + $0x50] sm:$0xff]   ;;  %p1339_p2 = scmp.ne.s32.totalorder %s1004_s11, %s1338_s12  ;;  %p1344_p4 = scmp.lt.s32.totalorder %s1338_s12, %s1338_s12 }
  0x40   :  { %v1264_v20 = vld [vmem:[#allocation5] sm:$0xff]   ;;  %v1268_v25 = vld [vmem:[#allocation5 + $0x8] sm:$0xff]   ;;  %v1271_v28 = vld [vmem:[#allocation5 + $0xd0] sm:$0xff]  }
  0x41   :  { %614 = vmatpush1.bf16.msra.mxu0 %v1198_v26  ;;  %v63_v11 = vrot.slane %v58_v9, %v62_v8  ;;  %v67_v12 = vrot.slane %v58_v9, %v66_v10  ;;  %v1265_v21 = vld [vmem:[#allocation5 + $0x80] sm:$0xff]   ;;  %v1269_v26 = vld [vmem:[#allocation5 + $0x88] sm:$0xff]   ;;  %p1345_p5 = por %p1344_p4, %p1343_p3 }
  0x42   :  { %615 = vmatprep.subr.bf16.mxu0 %v1206_v29  ;;  %575 = vmatpush1.bf16.msra.mxu1 %v1207_v31  ;;  %v1272_v29 = vld [vmem:[#allocation5 + $0x10] sm:$0xff]   ;;  %v1274_v31 = vld [vmem:[#allocation5 + $0x58] sm:$0xff]  }
  0x43   :  { %576 = vmatprep.subr.bf16.mxu1 %v1208_v32  ;;  %v1275_v32 = vld [vmem:[#allocation5 + $0xd8] sm:$0xff]   ;;  %p1346_p6 = pnand %p1345_p5, %p1339_p2 }
  0x45   :  { %616 = vmatpush1.bf16.msra.mxu0 %v1204_v30  ;;  %v1273_v30 = vld [vmem:[#allocation5 + $0x90] sm:$0xff]  }
  0x46   :  { %617 = vmatprep.subr.bf16.mxu0 %v1212_v33  ;;  %577 = vmatpush1.bf16.msra.mxu1 %v1213_v35  ;;  %v1276_v33 = vld [vmem:[#allocation5 + $0x18] sm:$0xff]   ;;  %v1278_v35 = vld [vmem:[#allocation5 + $0x60] sm:$0xff]  }
  0x47   :  { %578 = vmatprep.subr.bf16.mxu1 %v1214_v36  ;;  %v1279_v36 = vld [vmem:[#allocation5 + $0xe0] sm:$0xff]  }
  0x49   :  { %618 = vmatpush1.bf16.msra.mxu0 %v1210_v34  ;;  %v1277_v34 = vld [vmem:[#allocation5 + $0x98] sm:$0xff]  }
  0x4a   :  { %619 = vmatprep.subr.bf16.mxu0 %v1218_v37  ;;  %579 = vmatpush1.bf16.msra.mxu1 %v1219_v39  ;;  %v1280_v37 = vld [vmem:[#allocation5 + $0x20] sm:$0xff]   ;;  %v1282_v39 = vld [vmem:[#allocation5 + $0x68] sm:$0xff]  }
  0x4b   :  { %580 = vmatprep.subr.bf16.mxu1 %v1220_v40  ;;  %v1283_v40 = vld [vmem:[#allocation5 + $0xe8] sm:$0xff]  }
  0x4d   :  { %620 = vmatpush1.bf16.msra.mxu0 %v1216_v38  ;;  %v1281_v38 = vld [vmem:[#allocation5 + $0xa0] sm:$0xff]  }
  0x4e   :  { %621 = vmatprep.subr.bf16.mxu0 %v1224_v41  ;;  %581 = vmatpush1.bf16.msra.mxu1 %v1225_v43  ;;  %v1284_v41 = vld [vmem:[#allocation5 + $0x28] sm:$0xff]   ;;  %v1286_v43 = vld [vmem:[#allocation5 + $0x70] sm:$0xff]  }
  0x4f   :  { %582 = vmatprep.subr.bf16.mxu1 %v1226_v44  ;;  %v1287_v44 = vld [vmem:[#allocation5 + $0xf0] sm:$0xff]  }
  0x51   :  { %622 = vmatpush1.bf16.msra.mxu0 %v1222_v42  ;;  %v1285_v42 = vld [vmem:[#allocation5 + $0xa8] sm:$0xff]  }
  0x52   :  { %623 = vmatprep.subr.bf16.mxu0 %v1230_v45  ;;  %583 = vmatpush1.bf16.msra.mxu1 %v1231_v47  ;;  %v1288_v45 = vld [vmem:[#allocation5 + $0x30] sm:$0xff]   ;;  %v1290_v47 = vld [vmem:[#allocation5 + $0x78] sm:$0xff]  }
  0x53   :  { %584 = vmatprep.subr.bf16.mxu1 %v1232_v48  ;;  %v1291_v48 = vld [vmem:[#allocation5 + $0xf8] sm:$0xff]  }
  0x55   :  { %624 = vmatpush1.bf16.msra.mxu0 %v1228_v46  ;;  %v1289_v46 = vld [vmem:[#allocation5 + $0xb0] sm:$0xff]  }
  0x56   :  { %625 = vmatprep.subr.bf16.mxu0 %v1236_v49  ;;  %585 = vmatpush1.bf16.msra.mxu1 %v1237_v51  ;;  %v1292_v49 = vld [vmem:[#allocation5 + $0x38] sm:$0xff]   ;;  %v232_v51 = vsub.s32 2, %v1444_v7 }
  0x57   :  { %586 = vmatprep.subr.bf16.mxu1 %v1238_v52  ;;  %v220_v52 = vld [vmem:[%s1483_s4] sm:$0xf] }
  0x59   :  { %626 = vmatpush1.bf16.msra.mxu0 %v1234_v50  ;;  %v1293_v50 = vld [vmem:[#allocation5 + $0xb8] sm:$0xff]  }
  0x5a   :  { %627 = vmatprep.subr.bf16.mxu0 %v1242_v53  ;;  %587 = vmatpush1.bf16.msra.mxu1 %v1243_v55  ;;  %v236_v53 = vsub.s32 3, %v1444_v7  ;;  %v233_v55 = vrot.slane %v220_v52, %v232_v51 }
  0x5b   :  { %588 = vmatprep.subr.bf16.mxu1 %v1244_v56  ;;  %v229_v56 = vrot.slane %v220_v52, %v66_v10 }
  0x5d   :  { %628 = vmatpush1.bf16.msra.mxu0 %v1240_v54  ;;  %v225_v54 = vrot.slane %v220_v52, %v62_v8 }
  0x5e   :  { %629 = vmatprep.subr.bf16.mxu0 %v1248_v57  ;;  %589 = vmatpush1.bf16.msra.mxu1 %v1249_v59  ;;  %v237_v57 = vrot.slane %v220_v52, %v236_v53 }
  0x5f   :  { %590 = vmatprep.subr.bf16.mxu1 %v1250_v60 }
  0x61   :  { %630 = vmatpush1.bf16.msra.mxu0 %v1246_v58 }
  0x62   :  { %631 = vmatprep.subr.bf16.mxu0 %v1254_v61  ;;  %591 = vmatpush1.bf16.msra.mxu1 %v1255_v63 }
  0x63   :  { %592 = vmatprep.subr.bf16.mxu1 %v1256_v0 }
  0x65   :  { %632 = vmatpush1.bf16.msra.mxu0 %v1252_v62 }
  0x66   :  { %633 = vmatprep.subr.bf16.mxu0 %v1260_v1  ;;  %593 = vmatpush1.bf16.msra.mxu1 %v1261_v3 }
  0x67   :  { %1113 = vmatprep.subr.bf16.mxu1 %v1262_v4 }
  0x69   :  { %634 = vmatpush1.bf16.msra.mxu0 %v1258_v2 }
  0x6a   :  { %1135 = vmatprep.subr.bf16.mxu0 %v1263_v5 }
  0xff   :  { %v147_v13 = vpop.f32.mrb[0].mxu0 }
 0x100   :  { %v148_v14 = vadd.f32 %v147_v13, %v63_v11  ;;  %v149_v15 = vpop.f32.mrb[1].mxu0 }
 0x101   :  { %v150_v16 = vadd.f32 %v149_v15, %v67_v12 }
 0x102   :  { %v152_v17 = vmax.f32 %v148_v14, 0.0 }
 0x103   :  { %v153_v18 = vmax.f32 %v150_v16, 0.0  ;;  %v1080_v16 = vld [vmem:[%s1485_s6] ss:$0 sm:$0xff] }
 0x104   :  { %v154_v22 = vpack.c.bf16 %v152_v17, %v152_v17 }
 0x105   :  { %v155_v19 = vpack.c.bf16 %v153_v18, %v153_v18 }
 0x107   :  { %594 = vmatprep.mubr.bf16.mxu1 %v155_v19  ;;  %635 = vmatprep.mubr.bf16.mxu0 %v155_v19 }
 0x108   :  { %595 = vmatmul.mubr.bf16.vlgmr.msra.gmra.mrb[0].mxu1 %v154_v22  ;;  %636 = vmatmul.mubr.bf16.vlgmr.msra.gmra.mrb[4].mxu0 %v154_v22 }
 0x109   :  { %1114 = vmatpush3.bf16.msra.mxu1 %v1264_v20  ;;  %1136 = vmatpush3.bf16.msra.mxu0 %v1265_v21 }
 0x10a   :  { %1115 = vmatprep.subr.bf16.mxu1 %v1266_v23  ;;  %1137 = vmatprep.subr.bf16.mxu0 %v1267_v24 }
 0x10d   :  { %1116 = vmatpush3.bf16.msra.mxu1 %v1268_v25  ;;  %1138 = vmatpush3.bf16.msra.mxu0 %v1269_v26 }
 0x10e   :  { %1117 = vmatprep.subr.bf16.mxu1 %v1270_v27  ;;  %1139 = vmatprep.subr.bf16.mxu0 %v1271_v28 }
 0x111   :  { %1118 = vmatpush3.bf16.msra.mxu1 %v1272_v29  ;;  %1140 = vmatpush3.bf16.msra.mxu0 %v1273_v30 }
 0x112   :  { %1119 = vmatprep.subr.bf16.mxu1 %v1274_v31  ;;  %1141 = vmatprep.subr.bf16.mxu0 %v1275_v32 }
 0x115   :  { %1120 = vmatpush3.bf16.msra.mxu1 %v1276_v33  ;;  %1142 = vmatpush3.bf16.msra.mxu0 %v1277_v34 }
 0x116   :  { %1121 = vmatprep.subr.bf16.mxu1 %v1278_v35  ;;  %1143 = vmatprep.subr.bf16.mxu0 %v1279_v36 }
 0x119   :  { %1122 = vmatpush3.bf16.msra.mxu1 %v1280_v37  ;;  %1144 = vmatpush3.bf16.msra.mxu0 %v1281_v38 }
 0x11a   :  { %1123 = vmatprep.subr.bf16.mxu1 %v1282_v39  ;;  %1145 = vmatprep.subr.bf16.mxu0 %v1283_v40 }
 0x11d   :  { %1124 = vmatpush3.bf16.msra.mxu1 %v1284_v41  ;;  %1146 = vmatpush3.bf16.msra.mxu0 %v1285_v42 }
 0x11e   :  { %1125 = vmatprep.subr.bf16.mxu1 %v1286_v43  ;;  %1147 = vmatprep.subr.bf16.mxu0 %v1287_v44 }
 0x121   :  { %1126 = vmatpush3.bf16.msra.mxu1 %v1288_v45  ;;  %1148 = vmatpush3.bf16.msra.mxu0 %v1289_v46 }
 0x122   :  { %1127 = vmatprep.subr.bf16.mxu1 %v1290_v47  ;;  %1149 = vmatprep.subr.bf16.mxu0 %v1291_v48 }
 0x125   :  { %1128 = vmatpush3.bf16.msra.mxu1 %v1292_v49  ;;  %1150 = vmatpush3.bf16.msra.mxu0 %v1293_v50 }
 0x1db   :  { %v596_v58 = vpop.f32.mrb[0].mxu1  ;;  %v637_v59 = vpop.f32.mrb[4].mxu0 }
 0x1dc   :  { %v597_v60 = vadd.f32 %v596_v58, %v225_v54  ;;  %v638_v61 = vadd.f32 %v637_v59, %v233_v55  ;;  %v598_v62 = vpop.f32.mrb[1].mxu1  ;;  %v639_v63 = vpop.f32.mrb[5].mxu0 }
 0x1dd   :  { %v599_v0 = vadd.f32 %v598_v62, %v229_v56  ;;  %v640_v1 = vadd.f32 %v639_v63, %v237_v57  ;;  %v600_v2 = vpop.f32.mrb[2].mxu1  ;;  %v641_v3 = vpop.f32.mrb[6].mxu0 }
 0x1de   :  { %v644_v4 = vmax.f32 %v597_v60, 0.0  ;;  %v646_v5 = vmax.f32 %v638_v61, 0.0  ;;  %v601_v6 = vpop.f32.mrb[3].mxu1  ;;  %v642_v9 = vpop.f32.mrb[7].mxu0 }
 0x1df   :  { %v645_v8 = vmax.f32 %v599_v0, 0.0  ;;  %v647_v11 = vmax.f32 %v640_v1, 0.0 }
 0x1e0   :  { %v648_v10 = vpack.c.bf16 %v644_v4, %v644_v4  ;;  %v650_v13 = vpack.c.bf16 %v646_v5, %v646_v5 }
 0x1e1   :  { %v649_v12 = vpack.c.bf16 %v645_v8, %v645_v8  ;;  %v651_v7 = vpack.c.bf16 %v647_v11, %v647_v11 }
 0x1e3   :  { %947 = vmatprep.mubr.bf16.mxu1 %v649_v12  ;;  %987 = vmatprep.mubr.bf16.mxu0 %v651_v7 }
 0x1e4   :  { %948 = vmatmul.mubr.bf16.vlgmr.msra.gmra.mrb[4].mxu1 %v648_v10  ;;  %988 = vmatmul.mubr.bf16.vlgmr.msra.gmra.mrb[8].mxu0 %v650_v13 }
 0x2b7   :  { %v1129_v14 = vpop.f32.mrb[4].mxu1  ;;  %v1151_v15 = vpop.f32.mrb[8].mxu0 }
 0x2b8   :  { %v1130_v17 = vpop.f32.mrb[5].mxu1  ;;  %v1152_v18 = vpop.f32.mrb[9].mxu0 }
 0x2b9   :  { %v1131_v19 = vadd.f32 %v1130_v17, %v1129_v14  ;;  %v1153_v20 = vadd.f32 %v1152_v18, %v1151_v15  ;;  %v1132_v21 = vpop.f32.mrb[6].mxu1  ;;  %v1154_v22 = vpop.f32.mrb[10].mxu0 }
 0x2ba   :  { %v1133_v23 = vpop.f32.mrb[7].mxu1  ;;  %v1155_v24 = vpop.f32.mrb[11].mxu0 }
 0x2bb   :  { %v950_v25 = vadd.f32 %v1131_v19, %v1080_v16 }
 0x2bd   :  { %v990_v26 = vadd.f32 %v1153_v20, %v950_v25 }
 0x2bf   :  { %v995_v27 = vmax.f32 %v990_v26, 0.0 }
 0x2c1   :  { %996 = vst [vmem:[#allocation7] sm:$0xff] %v995_v27 }
 0x2c2   :  { %1349 = shalt.err (!%p1346_p6)
}
 0x2c3   :  { %s1350_s14 = scalar_lea.hbm %s1486_s7, 128 }
 0x2c4   :  { %p1351_p7 = scmp.ne.s32.totalorder %s1486_s7, %s1350_s14  ;;  %p1354_p8 = scmp.lt.u32.totalorder %s1350_s14, %s1486_s7 }
 0x2c6   :  { %p1356_p9 = pnand %p1354_p8, %p1351_p7 }
 0x2c8   :  { %1359 = shalt.err (!%p1356_p9)
}
 0x2c9   :  { %1006 = dma.vmem_to_hbm [thread:$0]  %s1004_s11, 128, %s1486_s7, [#allocation4]  }
 0x2ca   :  { %1364 = dma.done.wait [#allocation4], 128  }
 0x2cb   :  { %1365 = vsyncadd [#allocation4], 4294967168 }
 0x2cc   :  { %1010 = vsyncpa [#allocation3], 1 }
 0x2cd   :  { %1011 = vsyncpa [#allocation6], 1 }
 0x2ce   :  { %1012 = vsyncpa [#allocation4], 1 }

</bundles_post_ra>
